<compile_context>
chip_gen: v7x
topology: tpu7x:2x2x1
jax: 0.10.0
libtpu: 0.0.40
codegen_flags: <defaults>
</compile_context>

<pallas_src>
import functools

import jax
import jax.numpy as jnp
from jax.experimental import pallas as pl
from jax.experimental.pallas import tpu as pltpu


# ---------------------------------------------------------------------------
# shared epilogue: pointwise 1x1 conv + BN2 bias + ReLU + lane-dense store
# ---------------------------------------------------------------------------
def _pointwise_bias_relu_store(acc, wpw_ref, b2_ref, o_ref, use_mxu):
    """acc: (C, Ho*Wo) f32.  Writes (Cout, Ho*Wo) into o_ref[0]."""
    c = acc.shape[0]
    if use_mxu:
        # (Cout, C) @ (C, Ho*Wo): output is lane-dense and already NCHW.
        y = jnp.dot(wpw_ref[...].astype(jnp.float32), acc,
                    preferred_element_type=jnp.float32)
    else:
        # Tiny C/Cout: broadcast FMAs on the VPU, skip MXU fill/drain.
        wpw = wpw_ref[...].astype(jnp.float32)             # (Cout, C)
        y = None
        for cc in range(c):
            term = wpw[:, cc:cc + 1] * acc[cc:cc + 1, :]   # (Cout, Ho*Wo)
            y = term if y is None else y + term
    y = jnp.maximum(y + b2_ref[...].astype(jnp.float32), 0.0)
    o_ref[0] = y.astype(o_ref.dtype)


# ---------------------------------------------------------------------------
# stride == 1 fast path (channels on sublanes, flat H*W on lanes)
# ---------------------------------------------------------------------------
def _sepconv_stride1_kernel(x_ref, wdw_ref, wpw_ref, mask_ref, *rest,
                            relu_in_middle, h, w, pad_h, pad_w,
                            kh_sz, kw_sz, h_out, w_out, use_mxu):
    """One batch image per grid step.

    x_ref   : (1, C, H*W)     image, flat spatial on lanes (lane-dense read)
    wdw_ref : (C, KH*KW)      depthwise weights, BN1 scale folded in
    wpw_ref : (Cout, C)       pointwise weights, BN2 scale folded in
    mask_ref: (KW, Ho*Wo)     f32 {0,1} masks for the W-boundary kw groups
    rest    : [b1_ref (C,1)], b2_ref (Cout,1), o_ref (1,Cout,Ho*Wo),
              s_ref (C, Hp*W + KW)   H-padded flat zero-framed scratch
    """
    if relu_in_middle:
        b1_ref, b2_ref, o_ref, s_ref = rest
    else:
        b2_ref, o_ref, s_ref = rest
        b1_ref = None

    c = x_ref.shape[1]
    n_sp = h_out * w_out                       # w_out == w on this path

    # ---- build the H-padded flat image in VMEM (no HBM pad pass) ----------
    data_start = pad_w + pad_h * w
    data_end = data_start + h * w
    l_tot = s_ref.shape[1]
    # Zero only the pad strips; done every step so correctness holds when the
    # batch grid axis is sharded across TensorCores.
    if data_start > 0:
        s_ref[:, :data_start] = jnp.zeros((c, data_start), s_ref.dtype)
    if l_tot - data_end > 0:
        s_ref[:, data_end:] = jnp.zeros((c, l_tot - data_end), s_ref.dtype)
    s_ref[:, data_start:data_end] = x_ref[0]

    wdw = wdw_ref[...].astype(jnp.float32)     # (C, KH*KW), tiny

    # ---- depthwise conv: KW independent partial accumulators --------------
    # Each tap is a lane-dense FMA on (C, Ho*Wo); loads sit right next to
    # their FMA.  Only the off-centre kw groups need a W-boundary mask (the
    # H boundary is covered by the zero frame in the scratch).
    partials = []
    for kw in range(kw_sz):
        part = None
        for kh in range(kh_sz):
            off = kh * w + kw                                   # flat offset
            patch = s_ref[:, off:off + n_sp].astype(jnp.float32)  # (C,Ho*Wo)
            wtap = wdw[:, kh * kw_sz + kw:kh * kw_sz + kw + 1]     # (C, 1)
            term = patch * wtap
            part = term if part is None else part + term
        if kw != pad_w:
            part = part * mask_ref[kw:kw + 1, :]                 # (1, Ho*Wo)
        partials.append(part)
    acc = functools.reduce(lambda a, b: a + b, partials)        # (C, Ho*Wo)

    # ---- BN1 bias + optional middle ReLU (scales already in the weights) --
    if relu_in_middle:
        acc = jnp.maximum(acc + b1_ref[...].astype(jnp.float32), 0.0)
    # else: BN1 bias was folded into b2 in the wrapper (pointwise is linear).

    _pointwise_bias_relu_store(acc, wpw_ref, b2_ref, o_ref, use_mxu)


# ---------------------------------------------------------------------------
# general-stride fallback (per-parity decimation, fully padded scratch)
# ---------------------------------------------------------------------------
def _sepconv_strided_kernel(x_ref, wdw_ref, wpw_ref, *rest,
                            relu_in_middle, stride, h, w, pad_h, pad_w,
                            kh_sz, kw_sz, h_out, w_out, use_mxu):
    """x_ref: (1, C, H, W); scratch s_ref: (C, Hp, Wp) zero-padded frame."""
    if relu_in_middle:
        b1_ref, b2_ref, o_ref, s_ref = rest
    else:
        b2_ref, o_ref, s_ref = rest
        b1_ref = None

    c = x_ref.shape[1]
    hp, wp = h + 2 * pad_h, w + 2 * pad_w

    s_ref[...] = jnp.zeros_like(s_ref)
    s_ref[:, pad_h:pad_h + h, pad_w:pad_w + w] = x_ref[0]
    xpad = s_ref[...]                                           # (C, Hp, Wp)

    wdw = wdw_ref[...].astype(jnp.float32)                      # (C, KH*KW)

    # Per-parity decimation: stride**2 strided extractions instead of KH*KW.
    planes = {}
    for ph in range(min(stride, kh_sz)):
        for pw in range(min(stride, kw_sz)):
            nr = (hp - ph + stride - 1) // stride
            nc = (wp - pw + stride - 1) // stride
            planes[(ph, pw)] = jax.lax.slice(
                xpad, (0, ph, pw),
                (c, ph + (nr - 1) * stride + 1, pw + (nc - 1) * stride + 1),
                (1, stride, stride))

    acc = None
    for kh in range(kh_sz):
        for kw in range(kw_sz):
            pln = planes[(kh % stride, kw % stride)]
            oh, ow = kh // stride, kw // stride
            patch = pln[:, oh:oh + h_out, ow:ow + w_out].astype(jnp.float32)
            wtap = wdw[:, kh * kw_sz + kw:kh * kw_sz + kw + 1][:, :, None]
            term = patch * wtap                                  # (C, Ho, Wo)
            acc = term if acc is None else acc + term

    if relu_in_middle:
        acc = jnp.maximum(acc + b1_ref[...].astype(jnp.float32)[:, :, None],
                          0.0)

    acc = acc.reshape(c, h_out * w_out)                          # (C, Ho*Wo)
    _pointwise_bias_relu_store(acc, wpw_ref, b2_ref, o_ref, use_mxu)


# ---------------------------------------------------------------------------
# wrapper
# ---------------------------------------------------------------------------
def _fold_bn(gamma, beta, mean, var, eps=1e-5):
    scale = gamma / jnp.sqrt(var + eps)
    bias = beta - mean * scale
    return scale, bias


def separable_conv2d(x, w_dw, w_pw, bn1_params, bn2_params, *, stride=1,
                     relu_in_middle=True):
    """x: (N, C, H, W); w_dw: (C, KH, KW); w_pw: (Cout, C). Returns NCHW."""
    n, c, h, w = x.shape
    c_dw, kh_sz, kw_sz = w_dw.shape
    c_out, c_in = w_pw.shape
    assert c_dw == c and c_in == c

    pad_h, pad_w = kh_sz // 2, kw_sz // 2
    h_out = (h + 2 * pad_h - kh_sz) // stride + 1
    w_out = (w + 2 * pad_w - kw_sz) // stride + 1
    n_sp = h_out * w_out

    # ---- fold BN scales into the conv weights (wrapper-side, once) --------
    s1, b1 = _fold_bn(*bn1_params)
    s2, b2 = _fold_bn(*bn2_params)

    w_dw_f = (w_dw.astype(jnp.float32) * s1[:, None, None]).astype(w_dw.dtype)
    w_dw_f = w_dw_f.reshape(c, kh_sz * kw_sz)                   # (C, KH*KW)

    w_pw_s2 = w_pw.astype(jnp.float32) * s2[:, None]            # (Cout, C)
    w_pw_f = w_pw_s2.astype(w_pw.dtype)

    if relu_in_middle:
        b1_k = b1.reshape(c, 1).astype(jnp.float32)
        b2_k = b2.reshape(c_out, 1).astype(jnp.float32)
    else:
        # No middle ReLU -> push BN1 bias through the linear pointwise conv;
        # the b1 operand is then not passed at all (no dead DMA).
        b2_eff = b2 + w_pw_s2 @ b1.astype(jnp.float32)
        b1_k = None
        b2_k = b2_eff.reshape(c_out, 1).astype(jnp.float32)

    # Tiny channel counts -> VPU broadcast-FMAs; big ones -> MXU matmul.
    use_mxu = (c > 16) or (c_out > 128)

    itemsize = x.dtype.itemsize
    out_block_bytes = c_out * n_sp * itemsize
    const_bytes = (w_dw_f.size * w_dw_f.dtype.itemsize
                   + w_pw_f.size * w_pw_f.dtype.itemsize
                   + 4 * (c + c_out))

    if stride == 1 and w_out == w:
        # ---- fast path: flat spatial on lanes ------------------------------
        # W-boundary {0,1} masks, one row per kw group (the centre row is
        # skipped in-kernel).  TODO(synk): could be generated in-kernel from a
        # lane iota to avoid this (tiny) extra input.
        j = jnp.arange(w_out)
        rows = []
        for kw in range(kw_sz):
            dw = kw - pad_w
            valid = ((j + dw >= 0) & (j + dw < w)).astype(jnp.float32)
            rows.append(jnp.tile(valid, h_out))
        masks = jnp.stack(rows, axis=0)                          # (KW, Ho*Wo)

        hp = h + 2 * pad_h
        l_tot = hp * w + kw_sz                                   # flat scratch
        x_in = x.reshape(n, c, h * w)                            # free reshape

        kernel = functools.partial(
            _sepconv_stride1_kernel, relu_in_middle=relu_in_middle,
            h=h, w=w, pad_h=pad_h, pad_w=pad_w, kh_sz=kh_sz, kw_sz=kw_sz,
            h_out=h_out, w_out=w_out, use_mxu=use_mxu)

        in_arrays = [x_in, w_dw_f, w_pw_f, masks]
        in_specs = [
            pl.BlockSpec((1, c, h * w), lambda i: (i, 0, 0)),
            pl.BlockSpec((c, kh_sz * kw_sz), lambda i: (0, 0)),
            pl.BlockSpec((c_out, c), lambda i: (0, 0)),
            pl.BlockSpec((kw_sz, n_sp), lambda i: (0, 0)),
        ]
        const_bytes += masks.size * 4
        scratch_shapes = [pltpu.VMEM((c, l_tot), x.dtype)]
        scratch_bytes = c * l_tot * itemsize
        x_block_bytes = c * h * w * itemsize
    else:
        # ---- general-stride fallback ---------------------------------------
        kernel = functools.partial(
            _sepconv_strided_kernel, relu_in_middle=relu_in_middle,
            stride=stride, h=h, w=w, pad_h=pad_h, pad_w=pad_w,
            kh_sz=kh_sz, kw_sz=kw_sz, h_out=h_out, w_out=w_out,
            use_mxu=use_mxu)

        in_arrays = [x, w_dw_f, w_pw_f]
        in_specs = [
            pl.BlockSpec((1, c, h, w), lambda i: (i, 0, 0, 0)),
            pl.BlockSpec((c, kh_sz * kw_sz), lambda i: (0, 0)),
            pl.BlockSpec((c_out, c), lambda i: (0, 0)),
        ]
        scratch_shapes = [
            pltpu.VMEM((c, h + 2 * pad_h, w + 2 * pad_w), x.dtype)]
        scratch_bytes = c * (h + 2 * pad_h) * (w + 2 * pad_w) * itemsize
        x_block_bytes = c * h * w * itemsize

    if relu_in_middle:
        in_arrays.append(b1_k)
        in_specs.append(pl.BlockSpec((c, 1), lambda i: (0, 0)))
    in_arrays.append(b2_k)
    in_specs.append(pl.BlockSpec((c_out, 1), lambda i: (0, 0)))

    per_step = (2 * (x_block_bytes + out_block_bytes) + 2 * const_bytes
                + scratch_bytes)
    vmem_limit = int(min(32 * 2 ** 20, max(4 * 2 ** 20, 4 * per_step)))

    flops = 2 * n * n_sp * (c * kh_sz * kw_sz + c * c_out)
    bytes_accessed = (x.size * itemsize
                      + n * c_out * n_sp * itemsize
                      + const_bytes)

    out_flat = pl.pallas_call(
        kernel,
        out_shape=jax.ShapeDtypeStruct((n, c_out, n_sp), x.dtype),
        grid_spec=pltpu.PrefetchScalarGridSpec(
            num_scalar_prefetch=0,
            grid=(n,),
            in_specs=in_specs,
            out_specs=pl.BlockSpec((1, c_out, n_sp), lambda i: (i, 0, 0)),
            scratch_shapes=scratch_shapes),
        compiler_params=pltpu.CompilerParams(
            dimension_semantics=("parallel",),
            vmem_limit_bytes=vmem_limit),
        cost_estimate=pl.CostEstimate(
            flops=int(flops), transcendentals=0,
            bytes_accessed=int(bytes_accessed)),
    )(*in_arrays)

    # (N, Cout, Ho*Wo) -> (N, Cout, Ho, Wo): contiguous reshape, no transpose.
    return out_flat.reshape(n, c_out, h_out, w_out)


# ---------------------------------------------------------------------------
# plain-JAX reference (matches PyTorch eval-mode SeparableConv2d)
# ---------------------------------------------------------------------------
def _reference(x, w_dw, w_pw, bn1_params, bn2_params, *, stride,
               relu_in_middle):
    c = x.shape[1]
    c_out = w_pw.shape[0]
    kh, kw = w_dw.shape[1], w_dw.shape[2]
    y = jax.lax.conv_general_dilated(
        x.astype(jnp.float32),
        w_dw.reshape(c, 1, kh, kw).astype(jnp.float32),
        window_strides=(stride, stride),
        padding=((kh // 2, kh // 2), (kw // 2, kw // 2)),
        feature_group_count=c,
        dimension_numbers=("NCHW", "OIHW", "NCHW"),
    )
    s1, b1 = _fold_bn(*bn1_params)
    y = y * s1[None, :, None, None] + b1[None, :, None, None]
    if relu_in_middle:
        y = jnp.maximum(y, 0.0)
    y = jax.lax.conv_general_dilated(
        y,
        w_pw.reshape(c_out, c, 1, 1).astype(jnp.float32),
        window_strides=(1, 1),
        padding=((0, 0), (0, 0)),
        dimension_numbers=("NCHW", "OIHW", "NCHW"),
    )
    s2, b2 = _fold_bn(*bn2_params)
    y = y * s2[None, :, None, None] + b2[None, :, None, None]
    return jnp.maximum(y, 0.0)


if __name__ == "__main__":
    # Small shapes consistent with the module: N=2, Cin=4, Cout=8, 16x16, k=3.
    N, C_IN, C_OUT, H, W = 2, 4, 8, 16, 16
    KSIZE, STRIDE = 3, 1

    key = jax.random.PRNGKey(0)
    keys = jax.random.split(key, 10)
    x = jax.random.normal(keys[0], (N, C_IN, H, W), jnp.float32)
    w_dw = jax.random.normal(keys[1], (C_IN, KSIZE, KSIZE), jnp.float32) * 0.2
    w_pw = jax.random.normal(keys[2], (C_OUT, C_IN), jnp.float32) * 0.2

    bn1 = (
        1.0 + 0.1 * jax.random.normal(keys[3], (C_IN,), jnp.float32),    # gamma
        0.1 * jax.random.normal(keys[4], (C_IN,), jnp.float32),          # beta
        0.1 * jax.random.normal(keys[5], (C_IN,), jnp.float32),          # mean
        jnp.abs(jax.random.normal(keys[6], (C_IN,), jnp.float32)) + 1.0,  # var
    )
    bn2 = (
        1.0 + 0.1 * jax.random.normal(keys[7], (C_OUT,), jnp.float32),
        0.1 * jax.random.normal(keys[8], (C_OUT,), jnp.float32),
        0.05 * jax.random.normal(keys[9], (C_OUT,), jnp.float32),
        jnp.ones((C_OUT,), jnp.float32) * 1.5,
    )

    ok = True
    for relu_mid in (True, False):
        out = separable_conv2d(x, w_dw, w_pw, bn1, bn2, stride=STRIDE,
                               relu_in_middle=relu_mid)
        out = jax.block_until_ready(out)
        ref = _reference(x, w_dw, w_pw, bn1, bn2, stride=STRIDE,
                         relu_in_middle=relu_mid)
        assert out.shape == (N, C_OUT, H, W), out.shape
        if not jnp.allclose(out, ref, atol=1e-4, rtol=1e-4):
            ok = False
            print(f"mismatch vs reference (relu_in_middle={relu_mid}), "
                  f"max err = {jnp.max(jnp.abs(out - ref))}")

    assert ok, "mismatch vs reference"
    print("KERNEL_OK")
</pallas_src>

<mosaic_0001>
module attributes {stable_mosaic.version = 11 : i64} {
  func.func @_sepconv_stride1_kernel(%arg0: i32, %arg1: memref<1x4x256xf32, #tpu.memory_space<vmem>>, %arg2: memref<4x9xf32, #tpu.memory_space<vmem>>, %arg3: memref<8x4xf32, #tpu.memory_space<vmem>>, %arg4: memref<3x256xf32, #tpu.memory_space<vmem>>, %arg5: memref<4x1xf32, #tpu.memory_space<vmem>>, %arg6: memref<8x1xf32, #tpu.memory_space<vmem>>, %arg7: memref<1x8x256xf32, #tpu.memory_space<vmem>>, %arg8: memref<4x291xf32, #tpu.memory_space<vmem>>) attributes {dimension_semantics = [#tpu.dimension_semantics<parallel>], iteration_bounds = array<i64: 2>, scalar_prefetch = 0 : i64, scratch_operands = 1 : i64, tpu.core_type = #tpu.core_type<tc>, window_params = [{transform_indices = @transform_0, window_bounds = array<i64: 1, 4, 256>}, {pipeline_mode = #tpu.pipeline_mode<synchronous>, transform_indices = @transform_1, window_bounds = array<i64: 4, 9>}, {pipeline_mode = #tpu.pipeline_mode<synchronous>, transform_indices = @transform_2, window_bounds = array<i64: 8, 4>}, {pipeline_mode = #tpu.pipeline_mode<synchronous>, transform_indices = @transform_3, window_bounds = array<i64: 3, 256>}, {pipeline_mode = #tpu.pipeline_mode<synchronous>, transform_indices = @transform_4, window_bounds = array<i64: 4, 1>}, {pipeline_mode = #tpu.pipeline_mode<synchronous>, transform_indices = @transform_5, window_bounds = array<i64: 8, 1>}, {transform_indices = @transform_6, window_bounds = array<i64: 1, 8, 256>}]} {
    %cst = arith.constant 0.000000e+00 : f32
    %0 = vector.broadcast %cst : f32 to vector<4x17xf32>
    %c0 = arith.constant 0 : index
    %c0_0 = arith.constant 0 : index
    %1 = vector.load %arg8[%c0, %c0_0] : memref<4x291xf32, #tpu.memory_space<vmem>>, vector<4x17xf32>
    tpu.vector_store %arg8[%c0, %c0_0], %0 {strides = array<i32>} : memref<4x291xf32, #tpu.memory_space<vmem>>, vector<4x17xf32>,
    %cst_1 = arith.constant 0.000000e+00 : f32
    %2 = vector.broadcast %cst_1 : f32 to vector<4x18xf32>
    %c0_2 = arith.constant 0 : index
    %c273 = arith.constant 273 : index
    %3 = vector.load %arg8[%c0_2, %c273] : memref<4x291xf32, #tpu.memory_space<vmem>>, vector<4x18xf32>
    tpu.vector_store %arg8[%c0_2, %c273], %2 {strides = array<i32>} : memref<4x291xf32, #tpu.memory_space<vmem>>, vector<4x18xf32>,
    %c0_3 = arith.constant 0 : index
    %c0_4 = arith.constant 0 : index
    %c0_5 = arith.constant 0 : index
    %4 = vector.load %arg1[%c0_3, %c0_4, %c0_5] : memref<1x4x256xf32, #tpu.memory_space<vmem>>, vector<1x4x256xf32>
    %5 = vector.shape_cast %4 : vector<1x4x256xf32> to vector<4x256xf32>
    %c0_6 = arith.constant 0 : index
    %c17 = arith.constant 17 : index
    %6 = vector.load %arg8[%c0_6, %c17] : memref<4x291xf32, #tpu.memory_space<vmem>>, vector<4x256xf32>
    tpu.vector_store %arg8[%c0_6, %c17], %5 {strides = array<i32>} : memref<4x291xf32, #tpu.memory_space<vmem>>, vector<4x256xf32>,
    %c0_7 = arith.constant 0 : index
    %c0_8 = arith.constant 0 : index
    %7 = vector.load %arg2[%c0_7, %c0_8] : memref<4x9xf32, #tpu.memory_space<vmem>>, vector<4x9xf32>
    %c0_9 = arith.constant 0 : index
    %c0_10 = arith.constant 0 : index
    %8 = vector.load %arg8[%c0_9, %c0_10] : memref<4x291xf32, #tpu.memory_space<vmem>>, vector<4x256xf32>
    %9 = vector.extract_strided_slice %7 {offsets = [0, 0], sizes = [4, 1], strides = [1, 1]} : vector<4x9xf32> to vector<4x1xf32>
    %10 = vector.broadcast %9 : vector<4x1xf32> to vector<4x256xf32>
    %11 = arith.mulf %8, %10 : vector<4x256xf32>
    %c0_11 = arith.constant 0 : index
    %c16 = arith.constant 16 : index
    %12 = vector.load %arg8[%c0_11, %c16] : memref<4x291xf32, #tpu.memory_space<vmem>>, vector<4x256xf32>
    %13 = vector.extract_strided_slice %7 {offsets = [0, 3], sizes = [4, 1], strides = [1, 1]} : vector<4x9xf32> to vector<4x1xf32>
    %14 = vector.broadcast %13 : vector<4x1xf32> to vector<4x256xf32>
    %15 = arith.mulf %12, %14 : vector<4x256xf32>
    %16 = arith.addf %11, %15 : vector<4x256xf32>
    %c0_12 = arith.constant 0 : index
    %c32 = arith.constant 32 : index
    %17 = vector.load %arg8[%c0_12, %c32] : memref<4x291xf32, #tpu.memory_space<vmem>>, vector<4x256xf32>
    %18 = vector.extract_strided_slice %7 {offsets = [0, 6], sizes = [4, 1], strides = [1, 1]} : vector<4x9xf32> to vector<4x1xf32>
    %19 = vector.broadcast %18 : vector<4x1xf32> to vector<4x256xf32>
    %20 = arith.mulf %17, %19 : vector<4x256xf32>
    %21 = arith.addf %16, %20 : vector<4x256xf32>
    %c0_13 = arith.constant 0 : index
    %c0_14 = arith.constant 0 : index
    %22 = vector.load %arg4[%c0_13, %c0_14] : memref<3x256xf32, #tpu.memory_space<vmem>>, vector<1x256xf32>
    %23 = vector.broadcast %22 : vector<1x256xf32> to vector<4x256xf32>
    %24 = arith.mulf %21, %23 : vector<4x256xf32>
    %c0_15 = arith.constant 0 : index
    %c1 = arith.constant 1 : index
    %25 = vector.load %arg8[%c0_15, %c1] : memref<4x291xf32, #tpu.memory_space<vmem>>, vector<4x256xf32>
    %26 = vector.extract_strided_slice %7 {offsets = [0, 1], sizes = [4, 1], strides = [1, 1]} : vector<4x9xf32> to vector<4x1xf32>
    %27 = vector.broadcast %26 : vector<4x1xf32> to vector<4x256xf32>
    %28 = arith.mulf %25, %27 : vector<4x256xf32>
    %c0_16 = arith.constant 0 : index
    %c17_17 = arith.constant 17 : index
    %29 = vector.load %arg8[%c0_16, %c17_17] : memref<4x291xf32, #tpu.memory_space<vmem>>, vector<4x256xf32>
    %30 = vector.extract_strided_slice %7 {offsets = [0, 4], sizes = [4, 1], strides = [1, 1]} : vector<4x9xf32> to vector<4x1xf32>
    %31 = vector.broadcast %30 : vector<4x1xf32> to vector<4x256xf32>
    %32 = arith.mulf %29, %31 : vector<4x256xf32>
    %33 = arith.addf %28, %32 : vector<4x256xf32>
    %c0_18 = arith.constant 0 : index
    %c33 = arith.constant 33 : index
    %34 = vector.load %arg8[%c0_18, %c33] : memref<4x291xf32, #tpu.memory_space<vmem>>, vector<4x256xf32>
    %35 = vector.extract_strided_slice %7 {offsets = [0, 7], sizes = [4, 1], strides = [1, 1]} : vector<4x9xf32> to vector<4x1xf32>
    %36 = vector.broadcast %35 : vector<4x1xf32> to vector<4x256xf32>
    %37 = arith.mulf %34, %36 : vector<4x256xf32>
    %38 = arith.addf %33, %37 : vector<4x256xf32>
    %c0_19 = arith.constant 0 : index
    %c2 = arith.constant 2 : index
    %39 = vector.load %arg8[%c0_19, %c2] : memref<4x291xf32, #tpu.memory_space<vmem>>, vector<4x256xf32>
    %40 = vector.extract_strided_slice %7 {offsets = [0, 2], sizes = [4, 1], strides = [1, 1]} : vector<4x9xf32> to vector<4x1xf32>
    %41 = vector.broadcast %40 : vector<4x1xf32> to vector<4x256xf32>
    %42 = arith.mulf %39, %41 : vector<4x256xf32>
    %c0_20 = arith.constant 0 : index
    %c18 = arith.constant 18 : index
    %43 = vector.load %arg8[%c0_20, %c18] : memref<4x291xf32, #tpu.memory_space<vmem>>, vector<4x256xf32>
    %44 = vector.extract_strided_slice %7 {offsets = [0, 5], sizes = [4, 1], strides = [1, 1]} : vector<4x9xf32> to vector<4x1xf32>
    %45 = vector.broadcast %44 : vector<4x1xf32> to vector<4x256xf32>
    %46 = arith.mulf %43, %45 : vector<4x256xf32>
    %47 = arith.addf %42, %46 : vector<4x256xf32>
    %c0_21 = arith.constant 0 : index
    %c34 = arith.constant 34 : index
    %48 = vector.load %arg8[%c0_21, %c34] : memref<4x291xf32, #tpu.memory_space<vmem>>, vector<4x256xf32>
    %49 = vector.extract_strided_slice %7 {offsets = [0, 8], sizes = [4, 1], strides = [1, 1]} : vector<4x9xf32> to vector<4x1xf32>
    %50 = vector.broadcast %49 : vector<4x1xf32> to vector<4x256xf32>
    %51 = arith.mulf %48, %50 : vector<4x256xf32>
    %52 = arith.addf %47, %51 : vector<4x256xf32>
    %c2_22 = arith.constant 2 : index
    %c0_23 = arith.constant 0 : index
    %53 = vector.load %arg4[%c2_22, %c0_23] : memref<3x256xf32, #tpu.memory_space<vmem>>, vector<1x256xf32>
    %54 = vector.broadcast %53 : vector<1x256xf32> to vector<4x256xf32>
    %55 = arith.mulf %52, %54 : vector<4x256xf32>
    %56 = arith.addf %24, %38 : vector<4x256xf32>
    %57 = arith.addf %56, %55 : vector<4x256xf32>
    %c0_24 = arith.constant 0 : index
    %c0_25 = arith.constant 0 : index
    %58 = vector.load %arg5[%c0_24, %c0_25] : memref<4x1xf32, #tpu.memory_space<vmem>>, vector<4x1xf32>
    %59 = vector.broadcast %58 : vector<4x1xf32> to vector<4x256xf32>
    %60 = arith.addf %57, %59 : vector<4x256xf32>
    %cst_26 = arith.constant 0.000000e+00 : f32
    %61 = vector.broadcast %cst_26 : f32 to vector<4x256xf32>
    %62 = arith.maximumf %60, %61 : vector<4x256xf32>
    %c0_27 = arith.constant 0 : index
    %c0_28 = arith.constant 0 : index
    %63 = vector.load %arg3[%c0_27, %c0_28] : memref<8x4xf32, #tpu.memory_space<vmem>>, vector<8x4xf32>
    %64 = vector.extract_strided_slice %63 {offsets = [0, 0], sizes = [8, 1], strides = [1, 1]} : vector<8x4xf32> to vector<8x1xf32>
    %65 = vector.extract_strided_slice %62 {offsets = [0, 0], sizes = [1, 256], strides = [1, 1]} : vector<4x256xf32> to vector<1x256xf32>
    %66 = vector.broadcast %64 : vector<8x1xf32> to vector<8x256xf32>
    %67 = vector.broadcast %65 : vector<1x256xf32> to vector<8x256xf32>
    %68 = arith.mulf %66, %67 : vector<8x256xf32>
    %69 = vector.extract_strided_slice %63 {offsets = [0, 1], sizes = [8, 1], strides = [1, 1]} : vector<8x4xf32> to vector<8x1xf32>
    %70 = vector.extract_strided_slice %62 {offsets = [1, 0], sizes = [1, 256], strides = [1, 1]} : vector<4x256xf32> to vector<1x256xf32>
    %71 = vector.broadcast %69 : vector<8x1xf32> to vector<8x256xf32>
    %72 = vector.broadcast %70 : vector<1x256xf32> to vector<8x256xf32>
    %73 = arith.mulf %71, %72 : vector<8x256xf32>
    %74 = arith.addf %68, %73 : vector<8x256xf32>
    %75 = vector.extract_strided_slice %63 {offsets = [0, 2], sizes = [8, 1], strides = [1, 1]} : vector<8x4xf32> to vector<8x1xf32>
    %76 = vector.extract_strided_slice %62 {offsets = [2, 0], sizes = [1, 256], strides = [1, 1]} : vector<4x256xf32> to vector<1x256xf32>
    %77 = vector.broadcast %75 : vector<8x1xf32> to vector<8x256xf32>
    %78 = vector.broadcast %76 : vector<1x256xf32> to vector<8x256xf32>
    %79 = arith.mulf %77, %78 : vector<8x256xf32>
    %80 = arith.addf %74, %79 : vector<8x256xf32>
    %81 = vector.extract_strided_slice %63 {offsets = [0, 3], sizes = [8, 1], strides = [1, 1]} : vector<8x4xf32> to vector<8x1xf32>
    %82 = vector.extract_strided_slice %62 {offsets = [3, 0], sizes = [1, 256], strides = [1, 1]} : vector<4x256xf32> to vector<1x256xf32>
    %83 = vector.broadcast %81 : vector<8x1xf32> to vector<8x256xf32>
    %84 = vector.broadcast %82 : vector<1x256xf32> to vector<8x256xf32>
    %85 = arith.mulf %83, %84 : vector<8x256xf32>
    %86 = arith.addf %80, %85 : vector<8x256xf32>
    %c0_29 = arith.constant 0 : index
    %c0_30 = arith.constant 0 : index
    %87 = vector.load %arg6[%c0_29, %c0_30] : memref<8x1xf32, #tpu.memory_space<vmem>>, vector<8x1xf32>
    %88 = vector.broadcast %87 : vector<8x1xf32> to vector<8x256xf32>
    %89 = arith.addf %86, %88 : vector<8x256xf32>
    %cst_31 = arith.constant 0.000000e+00 : f32
    %90 = vector.broadcast %cst_31 : f32 to vector<8x256xf32>
    %91 = arith.maximumf %89, %90 : vector<8x256xf32>
    %c0_32 = arith.constant 0 : index
    %c0_33 = arith.constant 0 : index
    %c0_34 = arith.constant 0 : index
    %92 = vector.load %arg7[%c0_32, %c0_33, %c0_34] : memref<1x8x256xf32, #tpu.memory_space<vmem>>, vector<1x8x256xf32>
    %93 = vector.shape_cast %92 : vector<1x8x256xf32> to vector<8x256xf32>
    %94 = vector.shape_cast %91 : vector<8x256xf32> to vector<1x8x256xf32>
    tpu.vector_store %arg7[%c0_32, %c0_33, %c0_34], %94 {strides = array<i32>} : memref<1x8x256xf32, #tpu.memory_space<vmem>>, vector<1x8x256xf32>,
    return
  }
  func.func @transform_0(%arg0: i32) -> (i32, i32, i32) {
    %c0_i32 = arith.constant 0 : i32
    %c0_i32_0 = arith.constant 0 : i32
    %c0_i32_1 = arith.constant 0 : i32
    return %arg0, %c0_i32, %c0_i32_0 : i32, i32, i32
  }
  func.func @transform_1(%arg0: i32) -> (i32, i32) {
    %c0_i32 = arith.constant 0 : i32
    %c0_i32_0 = arith.constant 0 : i32
    %c0_i32_1 = arith.constant 0 : i32
    return %c0_i32, %c0_i32_0 : i32, i32
  }
  func.func @transform_2(%arg0: i32) -> (i32, i32) {
    %c0_i32 = arith.constant 0 : i32
    %c0_i32_0 = arith.constant 0 : i32
    %c0_i32_1 = arith.constant 0 : i32
    return %c0_i32, %c0_i32_0 : i32, i32
  }
  func.func @transform_3(%arg0: i32) -> (i32, i32) {
    %c0_i32 = arith.constant 0 : i32
    %c0_i32_0 = arith.constant 0 : i32
    %c0_i32_1 = arith.constant 0 : i32
    return %c0_i32, %c0_i32_0 : i32, i32
  }
  func.func @transform_4(%arg0: i32) -> (i32, i32) {
    %c0_i32 = arith.constant 0 : i32
    %c0_i32_0 = arith.constant 0 : i32
    %c0_i32_1 = arith.constant 0 : i32
    return %c0_i32, %c0_i32_0 : i32, i32
  }
  func.func @transform_5(%arg0: i32) -> (i32, i32) {
    %c0_i32 = arith.constant 0 : i32
    %c0_i32_0 = arith.constant 0 : i32
    %c0_i32_1 = arith.constant 0 : i32
    return %c0_i32, %c0_i32_0 : i32, i32
  }
  func.func @transform_6(%arg0: i32) -> (i32, i32, i32) {
    %c0_i32 = arith.constant 0 : i32
    %c0_i32_0 = arith.constant 0 : i32
    %c0_i32_1 = arith.constant 0 : i32
    return %arg0, %c0_i32, %c0_i32_0 : i32, i32, i32
  }
}

</mosaic_0001>

<bundles_post_ra>
// kernel: tpu_custom_call.1
= control target key start
LH: loop header
LB: loop body
LE: loop exit
PB: predicated region body
PF: predicated region fallthrough
CT: control target
= control target key end

     0   :  { %11 = vsyncpa [#allocation4], 0  ;;  %s1265_s0 = inlined_call_operand.vmem [shape: f32[2,4,256], index: 0, kind: input, shape index: {}]   ;;  %s1266_s1 = inlined_call_operand.hbm [shape: f32[4,9], index: 1, kind: input, shape index: {}]   ;;  %s1267_s2 = inlined_call_operand.vmem [shape: f32[8,4], index: 2, kind: input, shape index: {}]   ;;  %s1268_s3 = inlined_call_operand.vmem [shape: f32[3,256], index: 3, kind: input, shape index: {}]   ;;  %s1269_s4 = inlined_call_operand.vmem [shape: f32[4,1], index: 4, kind: input, shape index: {}]   ;;  %s1270_s5 = inlined_call_operand.vmem [shape: f32[8,1], index: 5, kind: input, shape index: {}]   ;;  %s1271_s6 = inlined_call_operand.hbm [shape: f32[2,8,256], index: 6, kind: output, shape index: {}]  }
   0x1   :  { %12 = vsyncpa [#allocation5], 0 }
   0x2   :  { %14 = vsyncpa [#allocation5 + $0x1], 0  ;;  %s1014_s21 = smov 0   ;;  %s1016_s22 = smov 0  }
   0x3   :  { %s1018_s23 = smov 0   ;;  %s1020_s24 = smov 0  }
   0x4 LB: > { %s1035_s25 = sadd.s32 4294967295, %s958_s24   ;;  %s765_s26 = sadd.s32 4294967294, %s958_s24   ;;  %s958_s24 = sphi %s1020_s24, %s1287_s24   ;;  %s954_s23 = sphi %s1018_s23, %s1286_s23   ;;  %s950_s22 = sphi %s1016_s22, %s1285_s22   ;;  %s946_s21 = sphi %s1014_s21, %s1284_s21  }
   0x5   : > { %s1039_s27 = sadd.s32 1, %s958_s24   ;;  %s158_s28 = sadd.s32 1, %s954_s23 }
   0x6   : > { %s155_s29 = ssub.s32 %s958_s24, %s1039_s27  ;;  %p168_p0 = scmp.ne.s32.totalorder %s954_s23, %s950_s22 }
   0x7   : > { %p156_p1 = scmp.eq.s32.totalorder %s155_s29, 0  ;;  %p169_p2 = scmp.eq.s32.totalorder %s1035_s25, 1 }
   0x8   : > { %p174_p3 = scmp.ne.s32.totalorder %s950_s22, %s946_s21  ;;  %p175_p4 = scmp.eq.s32.totalorder %s765_s26, 1 }
   0x9   : > { %s1050_s30 = scalar_select %p156_p1, %s954_s23, %s158_s28  }
   0xa   : > { %p1052_p5 = por %p169_p2, %p168_p0  ;;  %p1056_p6 = por %p175_p4, %p174_p3 }
   0xb   : > { %p766_p7 = scmp.ge.s32.totalorder %s958_s24, 1  ;;  %p182_p8 = scmp.lt.s32.totalorder %s958_s24, 3 }
   0xc   : > { %s1275_s7 = scalar_select %p1052_p5, 1, 0 }
   0xd   : > { %s1276_s8 = scalar_select %p1056_p6, 1, 0 }
   0xe   : > { %p1272_p9 = scmp.eq.s32.totalorder %s1035_s25, 0  ;;  %p1063_p10 = pnand %p766_p7, %p182_p8 }
   0xf   : > { %s960_s10 = smov [#allocation3]   ;;  %s864_s15 = scalar_lea.hbm %s1266_s1, 64 }
  0x10   : > { %s1277_s9 = scalar_select %p1063_p10, 1, 0 }
  0x11   : > { %s195_s11 = sshll.u32 %s960_s10, 4  ;;  %p788_p11 = pneg %p1063_p10  ;;  %s196_s11 = int_to_ptr.vmem [resolvable:$true] %s195_s11 }
  0x12   : > { %p865_p13 = scmp.ne.s32.totalorder %s1266_s1, %s864_s15  ;;  %p871_p3 = scmp.lt.u32.totalorder %s864_s15, %s1266_s1 }
  0x13   : > { %p1071_p12 = pnand %p1272_p9, %p788_p11 }
  0x15   : > { %p866_p0 = pneg %p1071_p12 }
  0x17   : > { %p867_p1 = pnand %p866_p0, %p865_p13 }
  0x19   : > { %p868_p2 = pneg %p867_p1 }
  0x1b   : > { %p873_p4 = pnand %p871_p3, %p868_p2 }
  0x1d   : > { %876 = shalt.err (!%p873_p4)
}
  0x1e   : > { %s877_s20 = scalar_lea.vmem %s196_s11, 64  ;;  %p885_p9 = scmp.lt.s32.totalorder %s196_s11, %s196_s11 }
  0x1f   : > { %p878_p7 = scmp.ne.s32.totalorder %s196_s11, %s877_s20  ;;  %p886_p6 = scmp.lt.s32.totalorder %s877_s20, %s877_s20 }
  0x21   : > { %p880_p8 = pnand %p878_p7, %p866_p0  ;;  %p887_p5 = por %p886_p6, %p885_p9 }
  0x23   : > { %p881_p11 = pneg %p880_p8 }
  0x25   : > { %p888_p10 = pnand %p887_p5, %p881_p11 }
  0x27   : > { %891 = shalt.err (!%p888_p10)
}
  0x28   : > { %791 = dma.hbm_to_vmem [thread:$0]  (!%p1071_p12), %s1266_s1, 64, %s196_s11, [#allocation4]  }
  0x29   : > { %p1279_p13 = scmp.ne.s32.totalorder %s1277_s9, 0 }
  0x2a   : > { %p1280_p1 = scmp.eq.s32.totalorder (!%p1279_p13), %s1035_s25, 0 }
  0x2b   : > { %228 = sbr.rel (%p1279_p13) target bundleno = 494 (0x1ee), region = 44 }
  0x32   : > { %937 = dma.done.wait (%p1280_p1), [#allocation4], 64   ;;  %p1281_p0 = pmov %p1280_p1 }
  0x33   : > { %p258_p6 = scmp.lt.s32.totalorder %s1035_s25, 1  ;;  %v961_v0 = vmov 5   ;;  %v962_v1 = vmov 4   ;;  %vm263_vm0 = vcmask 134144   ;;  %vm265_vm1 = vcmask 281736   ;;  %s964_s13 = smov 17  }
  0x34   : > { %939 = vsyncadd (%p1281_p0), [#allocation4], 4294967232  ;;  %850 = vset.pattern.permute.xlu1 %v961_v0  ;;  %849 = vset.pattern.permute.xlu0 %v962_v1  ;;  %v963_v2 = vmov 0.0   ;;  %v1103_v3 = vld [vmem:[#allocation3] sm:$0xf]  ;;  %v965_v5 = vmov 7   ;;  %v290_v16 = vlaneseq }
  0x35   : > { %s259_s29 = scalar_select %p258_p6, %s1035_s25, 1  ;;  %264 = vst.msk [vmem:[#allocation2] sm:$0xf] %vm263_vm0, %v963_v2  ;;  %447 = vperm.xlu1 %850, %v1103_v3   ;;  %v966_v6 = vmov 3   ;;  %v967_v7 = vmov 8   ;;  %v968_v8 = vmov 2  }
  0x36   : > { %266 = vst.msk [vmem:[#allocation2 + $0x8] sm:$0xf] %vm265_vm1, %v963_v2  ;;  %v969_v9 = vmov 6   ;;  %v970_v10 = vmov 1   ;;  %v971_v11 = vmov 0   ;;  %vm276_vm2 = vcmask 1043592  }
  0x37   : > { %s780_s9 = sshll.u32 %s259_s29, 3  ;;  %vm277_vm3 = vcmask 1047556   ;;  %vm272_vm4 = vcmask 138240   ;;  %v972_v14 = vmov 839922192   ;;  %v1119_v19 = vshrl.u32 %v290_v16, 7 }
  0x38   : > { %s262_s12 = scalar_lea.vmem %s1265_s0, %s780_s9  ;;  %vm278_vm5 = vmor %vm277_vm3, %vm276_vm2  ;;  %v288_v15 = vunpack.c.l.s4 %v972_v14  ;;  %s973_s14 = smov 112   ;;  %v774_v33 = vld [vmem:[%s1268_s3 + $0x2] ss:$4 sm:$0x3]  ;;  %vm319_vm6 = vcmask 1043456   ;;  %vm321_vm7 = vcmask 916480  }
  0x39   : > { %v267_v4 = vld [vmem:[%s262_s12] sm:$0xff]  ;;  %851 = vset.pattern.permute.xlu1 %v965_v5  ;;  %v1133_v30 = vsub.s32 0, %v1119_v19  ;;  %v1136_v31 = vsub.s32 1, %v1119_v19  ;;  %s974_s17 = smov 96   ;;  %s975_s18 = smov 2   ;;  %vm347_vm8 = vcmask 785408  }
  0x3a   : > { %269 = vrot.lane.b32.xlu0 %v267_v4, %s964_s13  ;;  %407 = vperm.xlu1 %851, %v1103_v3   ;;  %v289_v18 = vunpack.c.0.s8 %v288_v15  ;;  %v547_v45 = vld [vmem:[%s1269_s4] sm:$0xf]  ;;  %s976_s26 = smov 127   ;;  %vm515_vm9 = vcmask 15360   ;;  %s977_s28 = smov 126   ;;  %vm530_vm10 = vcmask 1039360  }
  0x3b   : > { %v506_v38 = vrot.slane %v774_v33, %v1133_v30  ;;  %v510_v39 = vrot.slane %v774_v33, %v1136_v31  ;;  %vm543_vm11 = vcmask 1031168   ;;  %s781_s16 = sshll.u32 %s1035_s25, 8  ;;  %p1282_p9 = scmp.ne.s32.totalorder %s1275_s7, 0 }
  0x3c   : > { %v1122_v20 = vsub.s32 %v289_v18, %v1119_v19  ;;  %s978_s29 = smov [#allocation6]  }
  0x3d   : > { %v511_v42 = vcombine.low %v506_v38, %v510_v39  ;;  %s896_s9 = sshll.u32 %s978_s29, 4  ;;  %s897_s9 = int_to_ptr.vmem [resolvable:$false] %s896_s9 }
  0x3e   : > { %380 = vperm.xlu0 %849, %v1103_v3   ;;  %852 = vset.pattern.permute.xlu1 %v967_v7  ;;  %s898_s10 = scalar_lea.vmem %s897_s9, 512 }
  0x3f   : > { %474 = vperm.xlu1 %852, %v1103_v3  }
  0x42   : > { %853 = vset.pattern.permute.xlu0 %v966_v6 }
  0x43   : > { %299 = vperm.xlu0 %853, %v1103_v3   ;;  %854 = vset.pattern.permute.xlu1 %v969_v9 }
  0x44   : > { %326 = vperm.xlu1 %854, %v1103_v3  }
  0x47   : > { %856 = vset.pattern.permute.xlu0 %v968_v8 }
  0x48   : > { %434 = vperm.xlu0 %856, %v1103_v3   ;;  %855 = vset.pattern.permute.xlu1 %v970_v10 }
  0x49   : > { %367 = vperm.xlu1 %855, %v1103_v3  }
  0x4c   : > { %858 = vset.pattern.permute.xlu0 %v971_v11 }
  0x4d   : > { %857 = vset.pattern.permute.xlu1 %v971_v11 }
  0xac   : > { %v270_v12 = vpop.permute.xlu0 %269 }
  0xad   : > { %v271_v13 = vrot.slane %v270_v12, 4 }
  0xaf   : > { %v273_v17 = vsel %vm272_vm4, %v271_v13, %v270_v12  ;;  %280 = vst.msk [vmem:[#allocation2 + $0x8] sm:$0xf] %vm263_vm0, %v271_v13 }
  0xb0   : > { %279 = vst.msk [vmem:[#allocation2] sm:$0xff] %vm278_vm5, %v273_v17 }
  0xb4   : > { %v448_v21 = vpop.permute.xlu1 %447 }
  0xb5   : > { %v455_v22 = vrot.slane %v448_v21, %v1122_v20 }
  0xb6   : > { %v365_v34 = vld [vmem:[#allocation2 + $0x8] sm:$0xf] }
  0xb7   : > { %v1125_v23 = vld [vmem:[#allocation2] sm:$0xff]  ;;  %v458_v41 = vmul.f32 %v455_v22, %v365_v34  ;;  %v297_v52 = vld [vmem:[#allocation2 + $0x8] sm:$0xf] }
  0xb8   : > { %v457_v24 = vmul.f32 %v455_v22, %v1125_v23 }
  0xb9   : > { %v408_v27 = vpop.permute.xlu1 %407 }
  0xba   : > { %461 = vrot.lane.b32.xlu0 %v457_v24, %s973_s14  ;;  %v415_v28 = vrot.slane %v408_v27, %v1122_v20 }
  0xbc   : > { %v417_v32 = vmul.f32 %v415_v28, %v1125_v23  ;;  %v418_v44 = vmul.f32 %v415_v28, %v365_v34 }
  0xbd   : > { %v381_v25 = vpop.permute.xlu0 %380 }
  0xbe   : > { %v388_v26 = vrot.slane %v381_v25, %v1122_v20  ;;  %v475_v35 = vpop.permute.xlu1 %474  ;;  %421 = vrot.lane.b32.xlu0 %v417_v32, %s974_s17 }
  0xbf   : > { %v482_v37 = vrot.slane %v475_v35, %v1122_v20 }
  0xc0   : > { %v390_v29 = vmul.f32 %v388_v26, %v1125_v23  ;;  %v391_v36 = vmul.f32 %v388_v26, %v365_v34 }
  0xc1   : > { %v484_v40 = vmul.f32 %v482_v37, %v1125_v23  ;;  %v485_v48 = vmul.f32 %v482_v37, %v365_v34 }
  0xc2   : > { %394 = vrot.lane.b32.xlu1 %v390_v29, %s973_s14  ;;  %v300_v43 = vpop.permute.xlu0 %299 }
  0xc3   : > { %488 = vrot.lane.b32.xlu0 %v484_v40, %s974_s17  ;;  %v307_v46 = vrot.slane %v300_v43, %v1122_v20  ;;  %v327_v47 = vpop.permute.xlu1 %326 }
  0xc4   : > { %v334_v50 = vrot.slane %v327_v47, %v1122_v20 }
  0xc5   : > { %v309_v49 = vmul.f32 %v1125_v23, %v307_v46  ;;  %v310_v53 = vmul.f32 %v307_v46, %v297_v52 }
  0xc6   : > { %396 = vrot.lane.b32.xlu1 %v391_v36, %s973_s14  ;;  %v336_v51 = vmul.f32 %v1125_v23, %v334_v50  ;;  %v337_v54 = vmul.f32 %v334_v50, %v297_v52 }
  0xc7   : > { %512 = vrot.lane.b32.xlu0 %v511_v42, %s975_s18  ;;  %v435_v55 = vpop.permute.xlu0 %434 }
  0xc8   : > { %v368_v56 = vpop.permute.xlu1 %367  ;;  %v442_v0 = vrot.slane %v435_v55, %v1122_v20 }
  0xc9   : > { %v375_v61 = vrot.slane %v368_v56, %v1122_v20 }
  0xca   : > { %463 = vrot.lane.b32.xlu1 %v458_v41, %s973_s14  ;;  %v444_v26 = vmul.f32 %v442_v0, %v1125_v23 }
  0xcb   : > { %550 = vperm.xlu0 %858, %v547_v45   ;;  %v378_v2 = vmul.f32 %v375_v61, %v365_v34  ;;  %v377_v12 = vmul.f32 %v375_v61, %v1125_v23 }
  0xce   : > { %423 = vrot.lane.b32.xlu1 %v418_v44, %s974_s17  ;;  %v562_v44 = vld [vmem:[%s1267_s2] sm:$0xff] }
  0xcf   : > { %313 = vrot.lane.b32.xlu0 %v309_v49, %s973_s14 }
  0xd2   : > { %490 = vrot.lane.b32.xlu1 %v485_v48, %s974_s17  ;;  %v667_v48 = vld [vmem:[%s1270_s5] sm:$0xff] }
  0xd3   : > { %340 = vrot.lane.b32.xlu0 %v336_v51, %s974_s17 }
  0xd6   : > { %285 = vperm.xlu1 %857, %v1103_v3  }
  0xda   : > { %315 = vrot.lane.b32.xlu1 %v310_v53, %s973_s14  ;;  %s255_s14 = sand.u32 1, %s950_s22  }
  0xdb   : > { %859 = vset.pattern.permute.xlu1 %v970_v10  ;;  %v445_v10 = vmul.f32 %v442_v0, %v365_v34  ;;  %s771_s15 = sshll.u32 %s255_s14, 4  ;;  %s680_s25 = scalar_lea.sflag [#allocation5], %s255_s14 }
  0xde   : > { %342 = vrot.lane.b32.xlu1 %v337_v54, %s974_s17  ;;  %s257_s17 = scalar_lea.vmem [#allocation6], %s771_s15 }
  0xdf   : > { %s694_s18 = sshll.u32 %s257_s17, 4  ;;  %s1223_s18 = int_to_ptr.vmem [resolvable:$true] %s694_s18 }
  0xe0   : > { %p899_p2 = scmp.lt.s32.totalorder %s1223_s18, %s897_s9 }
 0x12c   : > { %v462_v57 = vpop.permute.xlu0 %461 }
 0x12d   : > { %v465_v7 = vrot.slane %v462_v57, 4 }
 0x130   : > { %v422_v59 = vpop.permute.xlu0 %421 }
 0x131   : > { %v425_v15 = vrot.slane %v422_v59, 4 }
 0x134   : > { %v395_v58 = vpop.permute.xlu1 %394 }
 0x135   : > { %v398_v63 = vrot.slane %v395_v58, 4  ;;  %v489_v5 = vpop.permute.xlu0 %488 }
 0x136   : > { %v492_v27 = vrot.slane %v489_v5, 4 }
 0x138   : > { %v397_v60 = vpop.permute.xlu1 %396 }
 0x139   : > { %v399_v62 = vrot.slane %v397_v60, 4  ;;  %v405_v9 = vadd.f32 %v397_v60, %v378_v2  ;;  %v513_v21 = vpop.permute.xlu0 %512 }
 0x13a   : > { %v514_v33 = vrot.slane %v513_v21, 4 }
 0x13b   : > { %v400_v3 = vsel %vm319_vm6, %v398_v63, %v399_v62 }
 0x13c   : > { %v464_v1 = vpop.permute.xlu1 %463  ;;  %v401_v14 = vsel %vm321_vm7, %v395_v58, %v400_v3  ;;  %v516_v42 = vsel %vm515_vm9, %v514_v33, %v513_v21 }
 0x13d   : > { %v466_v4 = vrot.slane %v464_v1, 4  ;;  %v472_v22 = vadd.f32 %v464_v1, %v445_v10  ;;  %v404_v25 = vadd.f32 %v401_v14, %v377_v12 }
 0x13f   : > { %v467_v16 = vsel %vm319_vm6, %v465_v7, %v466_v4 }
 0x140   : > { %v424_v13 = vpop.permute.xlu1 %423  ;;  %v468_v28 = vsel %vm321_vm7, %v462_v57, %v467_v16 }
 0x141   : > { %v426_v17 = vrot.slane %v424_v13, 4  ;;  %v432_v18 = vadd.f32 %v424_v13, %v405_v9  ;;  %v471_v38 = vadd.f32 %v468_v28, %v444_v26  ;;  %v621_v26 = vsub.s32 2, %v1119_v19 }
 0x143   : > { %v427_v24 = vsel %vm319_vm6, %v425_v15, %v426_v17  ;;  %525 = vrot.lane.b32.xlu1 %v432_v18, %s976_s26 }
 0x144   : > { %v491_v29 = vpop.permute.xlu1 %490  ;;  %v428_v32 = vsel %vm347_vm8, %v422_v59, %v427_v24  ;;  %v599_v24 = vsub.s32 5, %v1119_v19 }
 0x145   : > { %v493_v34 = vrot.slane %v491_v29, 4  ;;  %v499_v35 = vadd.f32 %v491_v29, %v472_v22  ;;  %v431_v36 = vadd.f32 %v428_v32, %v404_v25  ;;  %v575_v25 = vsub.s32 4, %v1119_v19 }
 0x147   : > { %v494_v37 = vsel %vm319_vm6, %v492_v27, %v493_v34  ;;  %523 = vrot.lane.b32.xlu1 %v431_v36, %s976_s26  ;;  %v520_v40 = vmul.f32 %v514_v33, %v499_v35  ;;  %v625_v27 = vsub.s32 6, %v1119_v19  ;;  %v651_v34 = vsub.s32 7, %v1119_v19  ;;  %s1221_s26 = scalar_lea.hbm %s1271_s6, %s781_s16 }
 0x148   : > { %v495_v39 = vsel %vm347_vm8, %v489_v5, %v494_v37 }
 0x149   : > { %v498_v41 = vadd.f32 %v495_v39, %v471_v38 }
 0x14a   : > { %v551_v45 = vpop.permute.xlu0 %550 }
 0x14b   : > { %538 = vrot.lane.b32.xlu1 %v520_v40, %s977_s28  ;;  %v519_v43 = vmul.f32 %v516_v42, %v498_v41  ;;  %v558_v17 = vrot.slane %v551_v45, %v1122_v20 }
 0x14d   : > { %536 = vrot.lane.b32.xlu0 %v519_v43, %s977_s28  ;;  %s892_s28 = scalar_lea.vmem %s1223_s18, 256 }
 0x14e   : > { %v314_v46 = vpop.permute.xlu0 %313  ;;  %p893_p5 = scmp.ne.s32.totalorder %s1223_s18, %s892_s28  ;;  %p900_p3 = scmp.lt.s32.totalorder %s898_s10, %s892_s28 }
 0x14f   : > { %590 = vperm.xlu1 %859, %v562_v44   ;;  %v317_v50 = vrot.slane %v314_v46, 4 }
 0x150   : > { %p894_p10 = pnand %p893_p5, %p1282_p9  ;;  %p901_p4 = por %p900_p3, %p899_p2 }
 0x151   : > { %565 = vperm.xlu0 %858, %v562_v44  }
 0x152   : > { %p895_p12 = pneg %p894_p10 }
 0x153   : > { %861 = vset.pattern.permute.xlu1 %v966_v6  ;;  %v341_v6 = vpop.permute.xlu0 %340 }
 0x154   : > { %642 = vperm.xlu1 %861, %v562_v44   ;;  %v344_v56 = vrot.slane %v341_v6, 4  ;;  %p902_p7 = pnand %p901_p4, %p895_p12 }
 0x155   : > { %v286_v47 = vpop.permute.xlu1 %285  ;;  %860 = vset.pattern.permute.xlu0 %v968_v8 }
 0x156   : > { %616 = vperm.xlu0 %860, %v562_v44   ;;  %v293_v51 = vrot.slane %v286_v47, %v1122_v20  ;;  %v647_v20 = vsub.s32 3, %v1119_v19 }
 0x158   : > { %862 = vset.pattern.permute.xlu1 %v971_v11  ;;  %v295_v55 = vmul.f32 %v1125_v23, %v293_v51 }
 0x159   : > { %v316_v49 = vpop.permute.xlu1 %315  ;;  %670 = vperm.xlu1 %862, %v667_v48  }
 0x15a   : > { %v318_v52 = vrot.slane %v316_v49, 4  ;;  %863 = vset.pattern.permute.xlu0 %v971_v11  ;;  %v351_v11 = vld [vmem:[%s1268_s3] ss:$4 sm:$0x3] }
 0x15b   : > { %v356_v63 = vrot.slane %v351_v11, %v1133_v30  ;;  %v360_v0 = vrot.slane %v351_v11, %v1136_v31 }
 0x15c   : > { %v320_v53 = vsel %vm319_vm6, %v317_v50, %v318_v52 }
 0x15d   : > { %v322_v8 = vsel %vm321_vm7, %v314_v46, %v320_v53  ;;  %v343_v54 = vpop.permute.xlu1 %342  ;;  %v361_v3 = vcombine.low %v356_v63, %v360_v0 }
 0x15e   : > { %v345_v57 = vrot.slane %v343_v54, 4  ;;  %v324_v58 = vadd.f32 %v322_v8, %v295_v55 }
 0x160   : > { %v346_v59 = vsel %vm319_vm6, %v344_v56, %v345_v57 }
 0x161   : > { %v348_v60 = vsel %vm347_vm8, %v341_v6, %v346_v59 }
 0x162   : > { %v350_v61 = vadd.f32 %v348_v60, %v324_v58 }
 0x164   : > { %v363_v10 = vmul.f32 %v361_v3, %v350_v61 }
 0x1b5   : > { %v526_v62 = vpop.permute.xlu1 %525 }
 0x1b6   : > { %v528_v2 = vrot.slane %v526_v62, 4 }
 0x1b9   : > { %v524_v1 = vpop.permute.xlu1 %523 }
 0x1ba   : > { %v527_v23 = vrot.slane %v524_v1, 4 }
 0x1bc   : > { %v529_v4 = vsel %vm319_vm6, %v527_v23, %v528_v2 }
 0x1bd   : > { %v539_v5 = vpop.permute.xlu1 %538  ;;  %v531_v7 = vsel %vm530_vm10, %v524_v1, %v529_v4 }
 0x1be   : > { %v541_v12 = vrot.slane %v539_v5, 4  ;;  %v533_v14 = vadd.f32 %v531_v7, %v363_v10 }
 0x1bf   : > { %v537_v9 = vpop.permute.xlu0 %536 }
 0x1c0   : > { %v540_v13 = vrot.slane %v537_v9, 4 }
 0x1c2   : > { %v542_v15 = vsel %vm319_vm6, %v540_v13, %v541_v12 }
 0x1c3   : > { %v544_v16 = vsel %vm543_vm11, %v537_v9, %v542_v15 }
 0x1c4   : > { %v546_v18 = vadd.f32 %v544_v16, %v533_v14 }
 0x1c6   : > { %v560_v21 = vadd.f32 %v558_v17, %v546_v18 }
 0x1c8   : > { %v561_v22 = vmax.f32 %v560_v21, 0.0 }
 0x1ca   : > { %v596_v28 = vrot.slane %v561_v22, %v1136_v31  ;;  %v600_v29 = vrot.slane %v561_v22, %v599_v24  ;;  %v572_v32 = vrot.slane %v561_v22, %v1133_v30  ;;  %v576_v33 = vrot.slane %v561_v22, %v575_v25 }
 0x1cb   : > { %v622_v36 = vrot.slane %v561_v22, %v621_v26  ;;  %v626_v37 = vrot.slane %v561_v22, %v625_v27  ;;  %v648_v43 = vrot.slane %v561_v22, %v647_v20  ;;  %v652_v44 = vrot.slane %v561_v22, %v651_v34 }
 0x1cc   : > { %v606_v38 = vrot.slane %v596_v28, %v1136_v31  ;;  %v610_v39 = vrot.slane %v600_v29, %v1136_v31  ;;  %v582_v41 = vrot.slane %v572_v32, %v1133_v30  ;;  %v586_v42 = vrot.slane %v576_v33, %v1133_v30 }
 0x1cd   : > { %v632_v48 = vrot.slane %v622_v36, %v621_v26  ;;  %v636_v49 = vrot.slane %v626_v37, %v621_v26  ;;  %v658_v51 = vrot.slane %v648_v43, %v647_v20  ;;  %v662_v52 = vrot.slane %v652_v44, %v647_v20 }
 0x1ce   : > { %v591_v35 = vpop.permute.xlu1 %590 }
 0x1cf   : > { %v611_v47 = vmul.f32 %v606_v38, %v591_v35  ;;  %v612_v19 = vmul.f32 %v610_v39, %v591_v35 }
 0x1d0   : > { %v566_v40 = vpop.permute.xlu0 %565 }
 0x1d1   : > { %v587_v45 = vmul.f32 %v582_v41, %v566_v40  ;;  %v588_v46 = vmul.f32 %v586_v42, %v566_v40 }
 0x1d3   : > { %v643_v50 = vpop.permute.xlu1 %642  ;;  %v613_v6 = vadd.f32 %v611_v47, %v587_v45  ;;  %v614_v53 = vadd.f32 %v612_v19, %v588_v46 }
 0x1d4   : > { %v663_v54 = vmul.f32 %v658_v51, %v643_v50  ;;  %v664_v55 = vmul.f32 %v662_v52, %v643_v50 }
 0x1d5   : > { %v617_v31 = vpop.permute.xlu0 %616 }
 0x1d6   : > { %v637_v8 = vmul.f32 %v632_v48, %v617_v31  ;;  %v638_v30 = vmul.f32 %v636_v49, %v617_v31 }
 0x1d8   : > { %v639_v56 = vadd.f32 %v637_v8, %v613_v6  ;;  %v640_v57 = vadd.f32 %v638_v30, %v614_v53  ;;  %v671_v58 = vpop.permute.xlu1 %670 }
 0x1da   : > { %v665_v59 = vadd.f32 %v663_v54, %v639_v56  ;;  %v666_v60 = vadd.f32 %v664_v55, %v640_v57 }
 0x1dc   : > { %v673_v61 = vadd.f32 %v671_v58, %v665_v59  ;;  %v674_v62 = vadd.f32 %v671_v58, %v666_v60 }
 0x1de   : > { %v675_v11 = vmax.f32 %v673_v61, 0.0  ;;  %v676_v63 = vmax.f32 %v674_v62, 0.0 }
 0x1e0   : > { %677 = vst [vmem:[%s257_s17] sm:$0xff] %v675_v11  ;;  %678 = vst [vmem:[%s257_s17 + $0x8] sm:$0xff] %v676_v63 }
 0x1e1   : > { %905 = shalt.err (!%p902_p7)
}
 0x1e2   : > { %s906_s11 = scalar_lea.hbm %s1221_s26, 256  ;;  %s910_s14 = scalar_lea.hbm %s1271_s6, 512 }
 0x1e3   : > { %p907_p8 = scmp.ne.s32.totalorder %s1221_s26, %s906_s11  ;;  %p911_p1 = scmp.lt.u32.totalorder %s1221_s26, %s1271_s6 }
 0x1e4   : > { %p912_p0 = scmp.lt.u32.totalorder %s910_s14, %s906_s11  ;;  %p914_p5 = scmp.lt.u32.totalorder %s906_s11, %s1221_s26 }
 0x1e5   : > { %p908_p11 = pnand %p907_p8, %p1282_p9 }
 0x1e6   : > { %p913_p6 = por %p912_p0, %p911_p1 }
 0x1e7   : > { %p909_p13 = pneg %p908_p11 }
 0x1e8   : > { %p915_p10 = por %p914_p5, %p913_p6 }
 0x1ea   : > { %p916_p12 = pnand %p915_p10, %p909_p13 }
 0x1ec   : > { %919 = shalt.err (!%p916_p12)
}
 0x1ed   : > { %786 = dma.vmem_to_hbm [thread:$0]  (%p1282_p9), %s1223_s18, 256, %s1221_s26, %s680_s25  }
 0x1ee PF: > { %p798_p2 = scmp.ge.s32.totalorder %s958_s24, 2  ;;  %s706_s17 = sand.u32 1, %s946_s21  }
 0x1ef   : > { %p1283_p3 = scmp.ne.s32.totalorder %s1276_s8, 0  ;;  %s707_s19 = scalar_lea.sflag [#allocation5], %s706_s17 }
 0x1f1   : > { %p793_p4 = pnand %p798_p2, %p1283_p3 }
 0x1f3   : > { %941 = dma.done.wait (!%p793_p4), %s707_s19, 256  }
 0x1f4   : > { %943 = vsyncadd (!%p793_p4), %s707_s19, 4294967040  ;;  %p17_p7 = scmp.ge.s32.totalorder %s1039_s27, 4   ;;  %s1284_s21 = smov %s950_s22 }
 0x1f5   : > { %s1285_s22 = smov %s954_s23  ;;  %s1286_s23 = smov %s1050_s30 }
 0x1f6   : > { %s1287_s24 = smov %s1039_s27  ;;  %19 = sbr.rel (!%p17_p7) target bundleno = 4 (0x4), region = 85 }
 0x1fd   :  { %712 = vsyncpa [#allocation4], 1 }
 0x1fe   :  { %714 = vsyncpa [#allocation4 + $0x1], 1 }
 0x1ff   :  { %715 = vsyncpa [#allocation5], 1 }
 0x200   :  { %717 = vsyncpa [#allocation5 + $0x1], 1 }

</bundles_post_ra>
